<compile_context>
chip_gen: v5e
topology: v5e:2x2
jax: 0.10.0
libtpu: 0.0.40
codegen_flags: <defaults>
</compile_context>

<pallas_src>
import functools

import jax
import jax.numpy as jnp
from jax import lax
from jax.experimental import pallas as pl
from jax.experimental.pallas import tpu as pltpu

Z_DIM = 32          # args.z
H1 = 256            # linear1 out
H2 = 288            # linear2 out (= 32*1*3*3)
BN_EPS = 1e-5
ELU_ALPHA = 1.0


def _round_up(n, m):
    return ((n + m - 1) // m) * m


def generator_w1_kernel(x_ref, w1_ref, gb_ref, w2_ref, b2_ref, o_ref,
                        sum_ref, sumsq_ref, *, batch, inv_batch):
    p = pl.program_id(0)      # 0 = batch-stats pass, 1 = output pass
    t = pl.program_id(1)      # batch tile index
    tb = x_ref.shape[0]       # rows per tile (static)

    # ---- linear1 (bias dropped: cancels exactly under train-mode BatchNorm) ----
    h = jnp.dot(x_ref[...], w1_ref[...], preferred_element_type=jnp.float32)

    @pl.when(jnp.logical_and(p == 0, t == 0))
    def _init():
        sum_ref[...] = jnp.zeros_like(sum_ref)
        sumsq_ref[...] = jnp.zeros_like(sumsq_ref)

    @pl.when(p == 0)
    def _stats():
        # Mask padded tail rows out of the batch statistics.
        row = t * tb + lax.broadcasted_iota(jnp.int32, (tb, 1), 0)
        hm = jnp.where(row < batch, h, 0.0)
        sum_ref[...] += jnp.sum(hm, axis=0, keepdims=True)
        sumsq_ref[...] += jnp.sum(hm * hm, axis=0, keepdims=True)

    @pl.when(p == 1)
    def _emit():
        mean = sum_ref[...] * inv_batch                              # (1, H1)
        var = jnp.maximum(sumsq_ref[...] * inv_batch - mean * mean, 0.0)
        inv_std = lax.rsqrt(var + BN_EPS)
        scale = gb_ref[0:1, :] * inv_std                             # gamma / std
        shift = gb_ref[1:2, :] - mean * scale                        # beta - mean*gamma/std
        h_bn = h * scale + shift                                     # fused BN
        a = jnp.where(h_bn > 0, h_bn, ELU_ALPHA * (jnp.exp(h_bn) - 1.0))   # ELU
        out = jnp.dot(a.astype(w2_ref.dtype), w2_ref[...],
                      preferred_element_type=jnp.float32)
        o_ref[...] = (out + b2_ref[...]).astype(o_ref.dtype)


@functools.partial(jax.jit, static_argnames=("tile_b", "bf16_matmul"))
def generator_w1(x, w1, b1, gamma, beta, w2, b2, *, tile_b=512, bf16_matmul=False):
    """x: (B, z) float32 -> (B, 32, 1, 3, 3) float32.

    b1 is accepted for interface parity with the PyTorch module but is unused: the
    training-mode batch-norm mean removes it exactly.
    """
    del b1
    B, Z = x.shape
    assert w1.shape == (Z, H1) and w2.shape == (H1, H2), (w1.shape, w2.shape)

    gb = jnp.concatenate([gamma.reshape(1, H1), beta.reshape(1, H1)], axis=0)
    b2 = b2.reshape(1, H2)

    if bf16_matmul:
        # bf16 MXU inputs (2x rate, half weight traffic on v6e/v7x); accumulation and all
        # BN/ELU math stay f32.  Keep f32 on v5e (no bf16 VPU/EUP path).
        x, w1, w2 = (v.astype(jnp.bfloat16) for v in (x, w1, w2))

    align = 16 if bf16_matmul else 8
    tb = min(_round_up(tile_b, align), _round_up(B, align))
    b_pad = _round_up(B, tb)
    if b_pad != B:
        x = jnp.concatenate([x, jnp.zeros((b_pad - B, Z), x.dtype)], axis=0)
    nt = b_pad // tb

    kernel = functools.partial(generator_w1_kernel, batch=B, inv_batch=1.0 / B)

    out_flat = pl.pallas_call(
        kernel,
        out_shape=jax.ShapeDtypeStruct((b_pad, H2), jnp.float32),
        grid_spec=pltpu.PrefetchScalarGridSpec(
            num_scalar_prefetch=0,
            grid=(2, nt),                                        # (pass, batch tile)
            in_specs=[
                pl.BlockSpec((tb, Z), lambda p, t: (t, 0)),      # x tile (re-read per pass)
                pl.BlockSpec((Z, H1), lambda p, t: (0, 0)),      # w1   resident
                pl.BlockSpec((2, H1), lambda p, t: (0, 0)),      # gamma/beta resident
                pl.BlockSpec((H1, H2), lambda p, t: (0, 0)),     # w2   resident
                pl.BlockSpec((1, H2), lambda p, t: (0, 0)),      # b2   resident
            ],
            # Block index stays 0 through the whole stats pass -> no HBM writeback of
            # unwritten data; each output tile is flushed once, after pass 1 writes it.
            out_specs=pl.BlockSpec((tb, H2), lambda p, t: (t * p, 0)),
            scratch_shapes=[pltpu.VMEM((1, H1), jnp.float32),    # sum(h)
                            pltpu.VMEM((1, H1), jnp.float32)],   # sum(h*h)
        ),
        compiler_params=pltpu.CompilerParams(
            # Both axes are sequential: pass 1 depends on pass 0's scratch, and the
            # cross-tile BN reduction is carried in that scratch.
            dimension_semantics=("arbitrary", "arbitrary")),
    )(x, w1, gb, w2, b2)

    # view(-1, 32, 1, 3, 3); drop padded rows.
    return out_flat[:B].reshape(-1, 32, 1, 3, 3)


def init_params(key):
    """Deterministic synthetic parameters with the same shapes as the PyTorch module.

    PyTorch stores Linear weights as (out, in); we keep them pre-transposed (in, out)
    for the kernel's row-major matmuls.
    """
    k1, k2, k3, k4 = jax.random.split(key, 4)
    w1 = jax.random.uniform(k1, (Z_DIM, H1), jnp.float32, -1.0, 1.0) / jnp.sqrt(Z_DIM)
    b1 = jax.random.uniform(k2, (1, H1), jnp.float32, -1.0, 1.0) / jnp.sqrt(Z_DIM)
    w2 = jax.random.uniform(k3, (H1, H2), jnp.float32, -1.0, 1.0) / jnp.sqrt(H1)
    b2 = jax.random.uniform(k4, (1, H2), jnp.float32, -1.0, 1.0) / jnp.sqrt(H1)
    gamma = jnp.ones((1, H1), jnp.float32)   # BatchNorm1d defaults
    beta = jnp.zeros((1, H1), jnp.float32)
    return w1, b1, gamma, beta, w2, b2


def reference_forward(x, w1, b1, gamma, beta, w2, b2):
    """Pure-JAX reference mirroring the PyTorch forward (training-mode batchnorm)."""
    h = x @ w1 + b1
    mean = jnp.mean(h, axis=0, keepdims=True)
    var = jnp.mean((h - mean) ** 2, axis=0, keepdims=True)   # biased, as PyTorch normalizes
    h = (h - mean) / jnp.sqrt(var + BN_EPS) * gamma + beta
    a = jnp.where(h > 0, h, ELU_ALPHA * (jnp.exp(h) - 1.0))
    out = a @ w2 + b2
    return out.reshape(-1, 32, 1, 3, 3)


if __name__ == "__main__":
    key = jax.random.PRNGKey(0)
    k_x, k_p, k_x2 = jax.random.split(key, 3)

    params = init_params(k_p)

    # Small, single-tile case.
    B = 8
    x = jax.random.normal(k_x, (B, Z_DIM), jnp.float32)
    out = jax.block_until_ready(generator_w1(x, *params))
    ref = reference_forward(x, *params)
    assert out.shape == (B, 32, 1, 3, 3), out.shape
    assert jnp.allclose(out, ref, atol=1e-4, rtol=1e-4), float(jnp.max(jnp.abs(out - ref)))

    # Multi-tile case: exercises cross-tile BN stats accumulation + tail-row masking
    # (tile_b=16 -> 3 tiles over a padded batch of 48 for B=40).
    B2 = 40
    x2 = jax.random.normal(k_x2, (B2, Z_DIM), jnp.float32)
    out2 = jax.block_until_ready(generator_w1(x2, *params, tile_b=16))
    ref2 = reference_forward(x2, *params)
    assert out2.shape == (B2, 32, 1, 3, 3), out2.shape
    assert jnp.allclose(out2, ref2, atol=1e-4, rtol=1e-4), float(jnp.max(jnp.abs(out2 - ref2)))

    # bf16-matmul path (v6e/v7x option): smoke test with a loose bound, since it trades
    # precision for MXU rate by design.
    out_bf16 = jax.block_until_ready(generator_w1(x, *params, bf16_matmul=True))
    assert out_bf16.shape == (B, 32, 1, 3, 3)
    assert bool(jnp.all(jnp.isfinite(out_bf16)))
    assert float(jnp.max(jnp.abs(out_bf16 - ref))) < 0.5

    print("KERNEL_OK")
</pallas_src>

<mosaic_0001>
module attributes {stable_mosaic.version = 11 : i64} {
  func.func @generator_w1_kernel(%arg0: i32, %arg1: i32, %arg2: memref<8x32xf32, #tpu.memory_space<vmem>>, %arg3: memref<32x256xf32, #tpu.memory_space<vmem>>, %arg4: memref<2x256xf32, #tpu.memory_space<vmem>>, %arg5: memref<256x288xf32, #tpu.memory_space<vmem>>, %arg6: memref<1x288xf32, #tpu.memory_space<vmem>>, %arg7: memref<8x288xf32, #tpu.memory_space<vmem>>, %arg8: memref<1x256xf32, #tpu.memory_space<vmem>>, %arg9: memref<1x256xf32, #tpu.memory_space<vmem>>) attributes {dimension_semantics = [#tpu.dimension_semantics<arbitrary>, #tpu.dimension_semantics<arbitrary>], iteration_bounds = array<i64: 2, 1>, scalar_prefetch = 0 : i64, scratch_operands = 2 : i64, tpu.core_type = #tpu.core_type<tc>, window_params = [{transform_indices = @transform_0, window_bounds = array<i64: 8, 32>}, {pipeline_mode = #tpu.pipeline_mode<synchronous>, transform_indices = @transform_1, window_bounds = array<i64: 32, 256>}, {pipeline_mode = #tpu.pipeline_mode<synchronous>, transform_indices = @transform_2, window_bounds = array<i64: 2, 256>}, {pipeline_mode = #tpu.pipeline_mode<synchronous>, transform_indices = @transform_3, window_bounds = array<i64: 256, 288>}, {pipeline_mode = #tpu.pipeline_mode<synchronous>, transform_indices = @transform_4, window_bounds = array<i64: 1, 288>}, {transform_indices = @transform_5, window_bounds = array<i64: 8, 288>}]} {
    %c0 = arith.constant 0 : index
    %c0_0 = arith.constant 0 : index
    %0 = vector.load %arg2[%c0, %c0_0] : memref<8x32xf32, #tpu.memory_space<vmem>>, vector<8x32xf32>
    %c0_1 = arith.constant 0 : index
    %c0_2 = arith.constant 0 : index
    %1 = vector.load %arg3[%c0_1, %c0_2] : memref<32x256xf32, #tpu.memory_space<vmem>>, vector<32x256xf32>
    %cst = arith.constant dense<0.000000e+00> : vector<8x256xf32>
    %2 = tpu.matmul %0, %1, %cst {dimension_numbers = #tpu.dot_dimension_numbers<[1], [0], [0], [1], [0, 0, 1, 1], [], []>} : vector<8x32xf32>, vector<32x256xf32>, vector<8x256xf32> -> vector<8x256xf32>
    %c0_i32 = arith.constant 0 : i32
    %3 = arith.cmpi eq, %arg0, %c0_i32 : i32
    %c0_i32_3 = arith.constant 0 : i32
    %4 = arith.cmpi eq, %arg1, %c0_i32_3 : i32
    %5 = arith.andi %3, %4 : i1
    %6 = arith.extui %5 : i1 to i32
    %c0_i32_4 = arith.constant 0 : i32
    %7 = arith.cmpi ne, %6, %c0_i32_4 : i32
    scf.if %7 {
      %cst_8 = arith.constant 0.000000e+00 : f32
      %14 = vector.broadcast %cst_8 : f32 to vector<1x256xf32>
      %c0_9 = arith.constant 0 : index
      %c0_10 = arith.constant 0 : index
      %15 = vector.load %arg8[%c0_9, %c0_10] : memref<1x256xf32, #tpu.memory_space<vmem>>, vector<1x256xf32>
      tpu.vector_store %arg8[%c0_9, %c0_10], %14 {strides = array<i32>} : memref<1x256xf32, #tpu.memory_space<vmem>>, vector<1x256xf32>,
      %cst_11 = arith.constant 0.000000e+00 : f32
      %16 = vector.broadcast %cst_11 : f32 to vector<1x256xf32>
      %c0_12 = arith.constant 0 : index
      %c0_13 = arith.constant 0 : index
      %17 = vector.load %arg9[%c0_12, %c0_13] : memref<1x256xf32, #tpu.memory_space<vmem>>, vector<1x256xf32>
      tpu.vector_store %arg9[%c0_12, %c0_13], %16 {strides = array<i32>} : memref<1x256xf32, #tpu.memory_space<vmem>>, vector<1x256xf32>,
    } else {
    }
    %c0_i32_5 = arith.constant 0 : i32
    %8 = arith.cmpi eq, %arg0, %c0_i32_5 : i32
    %9 = arith.extui %8 : i1 to i32
    %c0_i32_6 = arith.constant 0 : i32
    %10 = arith.cmpi ne, %9, %c0_i32_6 : i32
    scf.if %10 {
      %c8_i32 = arith.constant 8 : i32
      %14 = arith.muli %arg1, %c8_i32 : i32
      %15 = tpu.iota {dimensions = array<i32: 0>} : vector<8x1xi32>
      %16 = vector.broadcast %14 : i32 to vector<8x1xi32>
      %17 = arith.addi %16, %15 : vector<8x1xi32>
      %c8_i32_8 = arith.constant 8 : i32
      %18 = vector.broadcast %c8_i32_8 : i32 to vector<8x1xi32>
      %19 = arith.cmpi slt, %17, %18 : vector<8x1xi32>
      %cst_9 = arith.constant 0.000000e+00 : f32
      %20 = vector.shape_cast %19 : vector<8x1xi1> to vector<8x1xi1>
      %21 = vector.broadcast %20 : vector<8x1xi1> to vector<8x256xi1>
      %22 = vector.broadcast %cst_9 : f32 to vector<8x256xf32>
      %23 = arith.select %21, %2, %22 : vector<8x256xi1>, vector<8x256xf32>
      %c0_10 = arith.constant 0 : index
      %c0_11 = arith.constant 0 : index
      %24 = vector.load %arg8[%c0_10, %c0_11] : memref<1x256xf32, #tpu.memory_space<vmem>>, vector<1x256xf32>
      %cst_12 = arith.constant dense<0.000000e+00> : vector<256xf32>
      %25 = vector.multi_reduction <add>, %23, %cst_12 [0] : vector<8x256xf32> to vector<256xf32>
      %26 = vector.shape_cast %25 : vector<256xf32> to vector<1x256xf32>
      %27 = arith.addf %24, %26 : vector<1x256xf32>
      %c0_13 = arith.constant 0 : index
      %c0_14 = arith.constant 0 : index
      %28 = vector.load %arg8[%c0_13, %c0_14] : memref<1x256xf32, #tpu.memory_space<vmem>>, vector<1x256xf32>
      tpu.vector_store %arg8[%c0_13, %c0_14], %27 {strides = array<i32>} : memref<1x256xf32, #tpu.memory_space<vmem>>, vector<1x256xf32>,
      %c0_15 = arith.constant 0 : index
      %c0_16 = arith.constant 0 : index
      %29 = vector.load %arg9[%c0_15, %c0_16] : memref<1x256xf32, #tpu.memory_space<vmem>>, vector<1x256xf32>
      %30 = arith.mulf %23, %23 : vector<8x256xf32>
      %cst_17 = arith.constant dense<0.000000e+00> : vector<256xf32>
      %31 = vector.multi_reduction <add>, %30, %cst_17 [0] : vector<8x256xf32> to vector<256xf32>
      %32 = vector.shape_cast %31 : vector<256xf32> to vector<1x256xf32>
      %33 = arith.addf %29, %32 : vector<1x256xf32>
      %c0_18 = arith.constant 0 : index
      %c0_19 = arith.constant 0 : index
      %34 = vector.load %arg9[%c0_18, %c0_19] : memref<1x256xf32, #tpu.memory_space<vmem>>, vector<1x256xf32>
      tpu.vector_store %arg9[%c0_18, %c0_19], %33 {strides = array<i32>} : memref<1x256xf32, #tpu.memory_space<vmem>>, vector<1x256xf32>,
    } else {
    }
    %c1_i32 = arith.constant 1 : i32
    %11 = arith.cmpi eq, %arg0, %c1_i32 : i32
    %12 = arith.extui %11 : i1 to i32
    %c0_i32_7 = arith.constant 0 : i32
    %13 = arith.cmpi ne, %12, %c0_i32_7 : i32
    scf.if %13 {
      %c0_8 = arith.constant 0 : index
      %c0_9 = arith.constant 0 : index
      %14 = vector.load %arg8[%c0_8, %c0_9] : memref<1x256xf32, #tpu.memory_space<vmem>>, vector<1x256xf32>
      %cst_10 = arith.constant 1.250000e-01 : f32
      %15 = vector.broadcast %cst_10 : f32 to vector<1x256xf32>
      %16 = arith.mulf %14, %15 : vector<1x256xf32>
      %c0_11 = arith.constant 0 : index
      %c0_12 = arith.constant 0 : index
      %17 = vector.load %arg9[%c0_11, %c0_12] : memref<1x256xf32, #tpu.memory_space<vmem>>, vector<1x256xf32>
      %cst_13 = arith.constant 1.250000e-01 : f32
      %18 = vector.broadcast %cst_13 : f32 to vector<1x256xf32>
      %19 = arith.mulf %17, %18 : vector<1x256xf32>
      %20 = arith.mulf %16, %16 : vector<1x256xf32>
      %21 = arith.subf %19, %20 : vector<1x256xf32>
      %cst_14 = arith.constant 0.000000e+00 : f32
      %22 = vector.broadcast %cst_14 : f32 to vector<1x256xf32>
      %23 = arith.maximumf %21, %22 : vector<1x256xf32>
      %cst_15 = arith.constant 9.99999974E-6 : f32
      %24 = vector.broadcast %cst_15 : f32 to vector<1x256xf32>
      %25 = arith.addf %23, %24 : vector<1x256xf32>
      %26 = math.rsqrt %25 : vector<1x256xf32>
      %c0_16 = arith.constant 0 : index
      %c0_17 = arith.constant 0 : index
      %27 = vector.load %arg4[%c0_16, %c0_17] : memref<2x256xf32, #tpu.memory_space<vmem>>, vector<1x256xf32>
      %28 = arith.mulf %27, %26 : vector<1x256xf32>
      %c1 = arith.constant 1 : index
      %c0_18 = arith.constant 0 : index
      %29 = vector.load %arg4[%c1, %c0_18] : memref<2x256xf32, #tpu.memory_space<vmem>>, vector<1x256xf32>
      %30 = arith.mulf %16, %28 : vector<1x256xf32>
      %31 = arith.subf %29, %30 : vector<1x256xf32>
      %32 = vector.broadcast %28 : vector<1x256xf32> to vector<8x256xf32>
      %33 = arith.mulf %2, %32 : vector<8x256xf32>
      %34 = vector.broadcast %31 : vector<1x256xf32> to vector<8x256xf32>
      %35 = arith.addf %33, %34 : vector<8x256xf32>
      %cst_19 = arith.constant 0.000000e+00 : f32
      %36 = vector.broadcast %cst_19 : f32 to vector<8x256xf32>
      %37 = arith.cmpf ogt, %35, %36 : vector<8x256xf32>
      %38 = math.exp %35 : vector<8x256xf32>
      %cst_20 = arith.constant 1.000000e+00 : f32
      %39 = vector.broadcast %cst_20 : f32 to vector<8x256xf32>
      %40 = arith.subf %38, %39 : vector<8x256xf32>
      %cst_21 = arith.constant 1.000000e+00 : f32
      %41 = vector.broadcast %cst_21 : f32 to vector<8x256xf32>
      %42 = arith.mulf %41, %40 : vector<8x256xf32>
      %43 = arith.select %37, %35, %42 : vector<8x256xi1>, vector<8x256xf32>
      %c0_22 = arith.constant 0 : index
      %c0_23 = arith.constant 0 : index
      %44 = vector.load %arg5[%c0_22, %c0_23] : memref<256x288xf32, #tpu.memory_space<vmem>>, vector<256x288xf32>
      %cst_24 = arith.constant dense<0.000000e+00> : vector<8x288xf32>
      %45 = tpu.matmul %43, %44, %cst_24 {dimension_numbers = #tpu.dot_dimension_numbers<[1], [0], [0], [1], [0, 0, 1, 1], [], []>} : vector<8x256xf32>, vector<256x288xf32>, vector<8x288xf32> -> vector<8x288xf32>
      %c0_25 = arith.constant 0 : index
      %c0_26 = arith.constant 0 : index
      %46 = vector.load %arg6[%c0_25, %c0_26] : memref<1x288xf32, #tpu.memory_space<vmem>>, vector<1x288xf32>
      %47 = vector.broadcast %46 : vector<1x288xf32> to vector<8x288xf32>
      %48 = arith.addf %45, %47 : vector<8x288xf32>
      %c0_27 = arith.constant 0 : index
      %c0_28 = arith.constant 0 : index
      %49 = vector.load %arg7[%c0_27, %c0_28] : memref<8x288xf32, #tpu.memory_space<vmem>>, vector<8x288xf32>
      tpu.vector_store %arg7[%c0_27, %c0_28], %48 {strides = array<i32>} : memref<8x288xf32, #tpu.memory_space<vmem>>, vector<8x288xf32>,
    } else {
    }
    return
  }
  func.func @transform_0(%arg0: i32, %arg1: i32) -> (i32, i32) {
    %c0_i32 = arith.constant 0 : i32
    %c0_i32_0 = arith.constant 0 : i32
    return %arg1, %c0_i32 : i32, i32
  }
  func.func @transform_1(%arg0: i32, %arg1: i32) -> (i32, i32) {
    %c0_i32 = arith.constant 0 : i32
    %c0_i32_0 = arith.constant 0 : i32
    %c0_i32_1 = arith.constant 0 : i32
    return %c0_i32, %c0_i32_0 : i32, i32
  }
  func.func @transform_2(%arg0: i32, %arg1: i32) -> (i32, i32) {
    %c0_i32 = arith.constant 0 : i32
    %c0_i32_0 = arith.constant 0 : i32
    %c0_i32_1 = arith.constant 0 : i32
    return %c0_i32, %c0_i32_0 : i32, i32
  }
  func.func @transform_3(%arg0: i32, %arg1: i32) -> (i32, i32) {
    %c0_i32 = arith.constant 0 : i32
    %c0_i32_0 = arith.constant 0 : i32
    %c0_i32_1 = arith.constant 0 : i32
    return %c0_i32, %c0_i32_0 : i32, i32
  }
  func.func @transform_4(%arg0: i32, %arg1: i32) -> (i32, i32) {
    %c0_i32 = arith.constant 0 : i32
    %c0_i32_0 = arith.constant 0 : i32
    %c0_i32_1 = arith.constant 0 : i32
    return %c0_i32, %c0_i32_0 : i32, i32
  }
  func.func @transform_5(%arg0: i32, %arg1: i32) -> (i32, i32) {
    %0 = arith.muli %arg1, %arg0 : i32
    %c0_i32 = arith.constant 0 : i32
    %c0_i32_0 = arith.constant 0 : i32
    return %0, %c0_i32 : i32, i32
  }
}

</mosaic_0001>

<bundles_post_ra>
// kernel: generator_w1.1
= control target key start
LH: loop header
LB: loop body
LE: loop exit
PB: predicated region body
PF: predicated region fallthrough
CT: control target
= control target key end

     0   :  { %s817_s18 = smov 0   ;;  %s819_s19 = smov 0   ;;  %s1204_s0 = inlined_call_operand.vmem [shape: f32[8,32], index: 0, kind: input, shape index: {}]   ;;  %s1205_s1 = inlined_call_operand.vmem [shape: f32[32,256], index: 1, kind: input, shape index: {}]   ;;  %s1206_s2 = inlined_call_operand.vmem [shape: f32[2,256], index: 2, kind: input, shape index: {}]   ;;  %s1207_s3 = inlined_call_operand.vmem [shape: f32[256,288], index: 3, kind: input, shape index: {}]   ;;  %s1208_s4 = inlined_call_operand.vmem [shape: f32[1,288], index: 4, kind: input, shape index: {}]   ;;  %s1209_s5 = inlined_call_operand.vmem [shape: f32[8,288], index: 5, kind: output, shape index: {}]  }
   0x1   :  { %s821_s20 = smov 0  }
   0x2 LB: > { %s27_s21 = sadd.s32 1, %s780_s19  ;;  %p717_p0 = scmp.ge.s32.totalorder %s784_s20, 1  ;;  %s784_s20 = sphi %s821_s20, %s15_s20   ;;  %s780_s19 = sphi %s819_s19, %s1211_s19   ;;  %s776_s18 = sphi %s817_s18, %s1210_s18  }
   0x3   : > { %p29_p1 = scmp.ge.s32.totalorder %s27_s21, 2  ;;  %p200_p2 = scmp.lt.s32.totalorder %s784_s20, 3 }
   0x5   : > { %s1213_s21 = smov (%p29_p1, %s27_s21), 0  ;;  %p201_p3 = pnand %p717_p0, %p200_p2 }
   0x6   : > { %p292_p4 = scmp.eq.s32.totalorder (!%p201_p3), %s776_s18, 0 }
   0x7   : > { %204 = sbr.rel (%p201_p3) target bundleno = 390 (0x186), region = 40 }
   0xc   : > { %v246_v0 = vld [vmem:[%s1205_s1 + $0x30] sm:$0xff]  ;;  %v247_v1 = vld [vmem:[%s1205_s1 + $0x38] sm:$0xff]  ;;  %v244_v2 = vld [vmem:[%s1205_s1 + $0x20] sm:$0xff]  ;;  %vm248_vm0 = vcmask 261120   ;;  %v298_v11 = vlaneseq (%p292_p4)  ;;  %v786_v12 = vmov (%p292_p4), 0.0  }
   0xd   : > { %264 = vmatpush.msra.mxu0 %v246_v0  ;;  %284 = vmatpush.msra.mxu1 %v247_v1  ;;  %v245_v3 = vld [vmem:[%s1205_s1 + $0x28] sm:$0xff]  ;;  %v242_v4 = vld [vmem:[%s1205_s1 + $0x10] sm:$0xff]  ;;  %v243_v5 = vld [vmem:[%s1205_s1 + $0x18] sm:$0xff] }
   0xe   : > { %v240_v6 = vld [vmem:[%s1205_s1] sm:$0xff]  ;;  %v241_v7 = vld [vmem:[%s1205_s1 + $0x8] sm:$0xff]  ;;  %vm300_vm1 = vcmp.lt.s32.totalorder (%p292_p4), %v298_v11, 256 }
   0xf   : > { %265 = vmatpush.msra.mxu0 %v244_v2  ;;  %285 = vmatpush.msra.mxu1 %v245_v3  ;;  %v239_v8 = vld [vmem:[%s1204_s0] sm:$0xff]  ;;  %302 = vst.msk [vmem:[#allocation2] sm:$0x3] (%p292_p4), %vm300_vm1, %v786_v12 }
  0x10   : > { %303 = vst.msk [vmem:[#allocation3] sm:$0x3] (%p292_p4), %vm300_vm1, %v786_v12 }
  0x11   : > { %266 = vmatpush.msra.mxu0 %v242_v4  ;;  %286 = vmatpush.msra.mxu1 %v243_v5 }
  0x13   : > { %267 = vmatpush.msra.mxu0 %v240_v6  ;;  %287 = vmatpush.msra.mxu1 %v241_v7 }
  0x14   : > { %718 = vmatmul.msk.f32.vlgmr.msra.gmra.mxu0 %vm248_vm0, %v239_v8  ;;  %719 = vmatmul.msk.f32.vlgmr.msra.gmra.mxu1 %vm248_vm0, %v239_v8 }
  0x8d   : > { %297 = sbr.rel (!%p292_p4) target bundleno = 146 (0x92), region = 44 }
  0x91   : > { %v867_v9 = vpop.f32.mrf.mxu0  ;;  %v869_v10 = vpop.f32.mrf.mxu1 }
  0x92 PF: > { %p721_p5 = scmp.ne.s32.totalorder %s776_s18, 0 }
  0x94   : > { %306 = sbr.rel (%p721_p5) target bundleno = 173 (0xad), region = 48 }
  0x99   : > { %v318_v13 = vrot.slane %v867_v9, 4  ;;  %v324_v14 = vrot.slane %v869_v10, 4  ;;  %v343_v15 = vmul.f32 %v867_v9, %v867_v9  ;;  %v344_v16 = vmul.f32 %v869_v10, %v869_v10  ;;  %v317_v38 = vld [vmem:[#allocation2] sm:$0x3]  ;;  %v342_v44 = vld [vmem:[#allocation3] sm:$0x3] }
  0x9a   : > { %v337_v35 = vlaneseq  ;;  %vm333_vm2 = vcmask 1040384  }
  0x9b   : > { %v319_v17 = vadd.f32 %v318_v13, %v867_v9  ;;  %v325_v18 = vadd.f32 %v324_v14, %v869_v10  ;;  %v345_v19 = vrot.slane %v343_v15, 4  ;;  %v351_v20 = vrot.slane %v344_v16, 4 }
  0x9c   : > { %vm339_vm3 = vcmp.lt.s32.totalorder %v337_v35, 256 }
  0x9d   : > { %v320_v21 = vrot.slane %v319_v17, 2  ;;  %v326_v22 = vrot.slane %v325_v18, 2  ;;  %v346_v23 = vadd.f32 %v345_v19, %v343_v15  ;;  %v352_v24 = vadd.f32 %v351_v20, %v344_v16 }
  0x9f   : > { %v321_v25 = vadd.f32 %v320_v21, %v319_v17  ;;  %v327_v26 = vadd.f32 %v326_v22, %v325_v18  ;;  %v347_v27 = vrot.slane %v346_v23, 2  ;;  %v353_v28 = vrot.slane %v352_v24, 2 }
  0xa1   : > { %v322_v29 = vrot.slane %v321_v25, 1  ;;  %v328_v30 = vrot.slane %v327_v26, 1  ;;  %v348_v31 = vadd.f32 %v347_v27, %v346_v23  ;;  %v354_v32 = vadd.f32 %v353_v28, %v352_v24 }
  0xa3   : > { %v323_v33 = vadd.f32 %v322_v29, %v321_v25  ;;  %v329_v34 = vadd.f32 %v328_v30, %v327_v26  ;;  %v349_v36 = vrot.slane %v348_v31, 1  ;;  %v355_v37 = vrot.slane %v354_v32, 1 }
  0xa5   : > { %v332_v39 = vrot.slane %v329_v34, 7  ;;  %v350_v40 = vadd.f32 %v349_v36, %v348_v31  ;;  %v356_v41 = vadd.f32 %v355_v37, %v354_v32 }
  0xa7   : > { %v334_v42 = vsel %vm333_vm2, %v323_v33, %v332_v39  ;;  %v359_v45 = vrot.slane %v356_v41, 7 }
  0xa8   : > { %v336_v43 = vadd.f32 %v334_v42, %v317_v38 }
  0xa9   : > { %v360_v46 = vsel %vm333_vm2, %v350_v40, %v359_v45 }
  0xaa   : > { %341 = vst.msk [vmem:[#allocation2] sm:$0x3] %vm339_vm3, %v336_v43  ;;  %v362_v47 = vadd.f32 %v360_v46, %v342_v44 }
  0xac   : > { %363 = vst.msk [vmem:[#allocation3] sm:$0x3] %vm339_vm3, %v362_v47 }
  0xad PF: > { %p722_p6 = scmp.ne.s32.totalorder %s776_s18, 1 }
  0xaf   : > { %367 = sbr.rel (%p722_p6) target bundleno = 390 (0x186), region = 52 }
  0xb4   : > { %v461_v48 = vld [vmem:[%s1207_s3 + $0x168] sm:$0xff]  ;;  %v458_v49 = vld [vmem:[%s1207_s3 + $0x150] sm:$0xff]  ;;  %v455_v52 = vld [vmem:[%s1207_s3 + $0x138] sm:$0xff] }
  0xb5   : > { %v509_v50 = vld [vmem:[%s1207_s3 + $0x2e8] sm:$0xff]  ;;  %520 = vmatpush.msra.mxu0 %v461_v48  ;;  %v506_v51 = vld [vmem:[%s1207_s3 + $0x2d0] sm:$0xff]  ;;  %v503_v53 = vld [vmem:[%s1207_s3 + $0x2b8] sm:$0xff] }
  0xb6   : > { %540 = vmatpush.msra.mxu1 %v509_v50  ;;  %v452_v54 = vld [vmem:[%s1207_s3 + $0x120] sm:$0xff]  ;;  %v449_v56 = vld [vmem:[%s1207_s3 + $0x108] sm:$0xff]  ;;  %v446_v58 = vld [vmem:[%s1207_s3 + $0xf0] sm:$0xff] }
  0xb7   : > { %521 = vmatpush.msra.mxu0 %v458_v49  ;;  %v500_v55 = vld [vmem:[%s1207_s3 + $0x2a0] sm:$0xff]  ;;  %v497_v57 = vld [vmem:[%s1207_s3 + $0x288] sm:$0xff]  ;;  %v494_v59 = vld [vmem:[%s1207_s3 + $0x270] sm:$0xff] }
  0xb8   : > { %541 = vmatpush.msra.mxu1 %v506_v51  ;;  %v462_v60 = vld [vmem:[%s1207_s3 + $0x170] sm:$0xff]  ;;  %v459_v61 = vld [vmem:[%s1207_s3 + $0x158] sm:$0xff]  ;;  %v456_v1 = vld [vmem:[%s1207_s3 + $0x140] sm:$0xff] }
  0xb9   : > { %522 = vmatpush.msra.mxu0 %v455_v52  ;;  %v510_v62 = vld [vmem:[%s1207_s3 + $0x2f0] sm:$0xff]  ;;  %v443_v63 = vld [vmem:[%s1207_s3 + $0xd8] sm:$0xff]  ;;  %560 = vmatpush.msra.mxu2 %v462_v60  ;;  %v440_v3 = vld [vmem:[%s1207_s3 + $0xc0] sm:$0xff] }
  0xba   : > { %542 = vmatpush.msra.mxu1 %v503_v53  ;;  %v491_v0 = vld [vmem:[%s1207_s3 + $0x258] sm:$0xff]  ;;  %580 = vmatpush.msra.mxu3 %v510_v62  ;;  %v488_v4 = vld [vmem:[%s1207_s3 + $0x240] sm:$0xff]  ;;  %v453_v6 = vld [vmem:[%s1207_s3 + $0x128] sm:$0xff] }
  0xbb   : > { %523 = vmatpush.msra.mxu0 %v452_v54  ;;  %v507_v2 = vld [vmem:[%s1207_s3 + $0x2d8] sm:$0xff]  ;;  %561 = vmatpush.msra.mxu2 %v459_v61  ;;  %v504_v5 = vld [vmem:[%s1207_s3 + $0x2c0] sm:$0xff]  ;;  %v501_v7 = vld [vmem:[%s1207_s3 + $0x2a8] sm:$0xff] }
  0xbc   : > { %543 = vmatpush.msra.mxu1 %v500_v55  ;;  %581 = vmatpush.msra.mxu3 %v507_v2  ;;  %v437_v8 = vld [vmem:[%s1207_s3 + $0xa8] sm:$0xff]  ;;  %v450_v12 = vld [vmem:[%s1207_s3 + $0x110] sm:$0xff]  ;;  %v447_v16 = vld [vmem:[%s1207_s3 + $0xf8] sm:$0xff] }
  0xbd   : > { %524 = vmatpush.msra.mxu0 %v449_v56  ;;  %v485_v11 = vld [vmem:[%s1207_s3 + $0x228] sm:$0xff]  ;;  %562 = vmatpush.msra.mxu2 %v456_v1  ;;  %v498_v13 = vld [vmem:[%s1207_s3 + $0x290] sm:$0xff]  ;;  %v495_v17 = vld [vmem:[%s1207_s3 + $0x278] sm:$0xff] }
  0xbe   : > { %544 = vmatpush.msra.mxu1 %v497_v57  ;;  %582 = vmatpush.msra.mxu3 %v504_v5  ;;  %v434_v14 = vld [vmem:[%s1207_s3 + $0x90] sm:$0xff]  ;;  %v431_v18 = vld [vmem:[%s1207_s3 + $0x78] sm:$0xff]  ;;  %v444_v20 = vld [vmem:[%s1207_s3 + $0xe0] sm:$0xff] }
  0xbf   : > { %525 = vmatpush.msra.mxu0 %v446_v58  ;;  %v482_v15 = vld [vmem:[%s1207_s3 + $0x210] sm:$0xff]  ;;  %563 = vmatpush.msra.mxu2 %v453_v6  ;;  %v479_v19 = vld [vmem:[%s1207_s3 + $0x1f8] sm:$0xff]  ;;  %v492_v21 = vld [vmem:[%s1207_s3 + $0x260] sm:$0xff] }
  0xc0   : > { %545 = vmatpush.msra.mxu1 %v494_v59  ;;  %583 = vmatpush.msra.mxu3 %v501_v7  ;;  %v428_v22 = vld [vmem:[%s1207_s3 + $0x60] sm:$0xff]  ;;  %v441_v24 = vld [vmem:[%s1207_s3 + $0xc8] sm:$0xff]  ;;  %v438_v28 = vld [vmem:[%s1207_s3 + $0xb0] sm:$0xff] }
  0xc1   : > { %526 = vmatpush.msra.mxu0 %v443_v63  ;;  %564 = vmatpush.msra.mxu2 %v450_v12  ;;  %v476_v23 = vld [vmem:[%s1207_s3 + $0x1e0] sm:$0xff]  ;;  %v489_v25 = vld [vmem:[%s1207_s3 + $0x248] sm:$0xff]  ;;  %v486_v29 = vld [vmem:[%s1207_s3 + $0x230] sm:$0xff] }
  0xc2   : > { %546 = vmatpush.msra.mxu1 %v491_v0  ;;  %584 = vmatpush.msra.mxu3 %v498_v13  ;;  %v425_v26 = vld [vmem:[%s1207_s3 + $0x48] sm:$0xff]  ;;  %v422_v30 = vld [vmem:[%s1207_s3 + $0x30] sm:$0xff]  ;;  %v435_v32 = vld [vmem:[%s1207_s3 + $0x98] sm:$0xff] }
  0xc3   : > { %527 = vmatpush.msra.mxu0 %v440_v3  ;;  %565 = vmatpush.msra.mxu2 %v447_v16  ;;  %v473_v27 = vld [vmem:[%s1207_s3 + $0x1c8] sm:$0xff]  ;;  %v470_v31 = vld [vmem:[%s1207_s3 + $0x1b0] sm:$0xff]  ;;  %v483_v33 = vld [vmem:[%s1207_s3 + $0x218] sm:$0xff] }
  0xc4   : > { %547 = vmatpush.msra.mxu1 %v488_v4  ;;  %585 = vmatpush.msra.mxu3 %v495_v17  ;;  %v419_v34 = vld [vmem:[%s1207_s3 + $0x18] sm:$0xff]  ;;  %v416_v36 = vld [vmem:[%s1207_s3] sm:$0xff]  ;;  %v429_v46 = vld [vmem:[%s1207_s3 + $0x68] sm:$0xff] }
  0xc5   : > { %528 = vmatpush.msra.mxu0 %v437_v8  ;;  %566 = vmatpush.msra.mxu2 %v444_v20  ;;  %v467_v35 = vld [vmem:[%s1207_s3 + $0x198] sm:$0xff]  ;;  %v432_v37 = vld [vmem:[%s1207_s3 + $0x80] sm:$0xff]  ;;  %v477_v47 = vld [vmem:[%s1207_s3 + $0x1e8] sm:$0xff] }
  0xc6   : > { %548 = vmatpush.msra.mxu1 %v485_v11  ;;  %586 = vmatpush.msra.mxu3 %v492_v21  ;;  %v480_v38 = vld [vmem:[%s1207_s3 + $0x200] sm:$0xff]  ;;  %v463_v42 = vld [vmem:[%s1207_s3 + $0x178] sm:$0xff]  ;;  %v426_v51 = vld [vmem:[%s1207_s3 + $0x50] sm:$0xff] }
  0xc7   : > { %529 = vmatpush.msra.mxu0 %v434_v14  ;;  %567 = vmatpush.msra.mxu2 %v441_v24  ;;  %v464_v39 = vld [vmem:[%s1207_s3 + $0x180] sm:$0xff]  ;;  %v511_v43 = vld [vmem:[%s1207_s3 + $0x2f8] sm:$0xff]  ;;  %v474_v52 = vld [vmem:[%s1207_s3 + $0x1d0] sm:$0xff] }
  0xc8   : > { %549 = vmatpush.msra.mxu1 %v482_v15  ;;  %587 = vmatpush.msra.mxu3 %v489_v25  ;;  %v368_v40 = vld [vmem:[#allocation2] sm:$0x3]  ;;  %v370_v41 = vld [vmem:[#allocation3] sm:$0x3]  ;;  %v457_v53 = vld [vmem:[%s1207_s3 + $0x148] sm:$0xff] }
  0xc9   : > { %530 = vmatpush.msra.mxu0 %v431_v18  ;;  %568 = vmatpush.msra.mxu2 %v438_v28  ;;  %v1049_v44 = vmul.f32 0.125, %v368_v40  ;;  %v371_v45 = vmul.f32 0.125, %v370_v41  ;;  %v460_v48 = vld [vmem:[%s1207_s3 + $0x160] sm:$0xff]  ;;  %v505_v54 = vld [vmem:[%s1207_s3 + $0x2c8] sm:$0xff]  ;;  %v423_v56 = vld [vmem:[%s1207_s3 + $0x38] sm:$0xff] }
  0xca   : > { %550 = vmatpush.msra.mxu1 %v479_v19  ;;  %588 = vmatpush.msra.mxu3 %v486_v29  ;;  %v508_v49 = vld [vmem:[%s1207_s3 + $0x2e0] sm:$0xff]  ;;  %v471_v57 = vld [vmem:[%s1207_s3 + $0x1b8] sm:$0xff]  ;;  %v454_v58 = vld [vmem:[%s1207_s3 + $0x130] sm:$0xff] }
  0xcb   : > { %531 = vmatpush.msra.mxu0 %v428_v22  ;;  %569 = vmatpush.msra.mxu2 %v435_v32  ;;  %v372_v50 = vmul.f32 %v1049_v44, %v1049_v44  ;;  %v502_v59 = vld [vmem:[%s1207_s3 + $0x2b0] sm:$0xff]  ;;  %v420_v61 = vld [vmem:[%s1207_s3 + $0x20] sm:$0xff]  ;;  %v451_v62 = vld [vmem:[%s1207_s3 + $0x118] sm:$0xff] }
  0xcc   : > { %551 = vmatpush.msra.mxu1 %v476_v23  ;;  %589 = vmatpush.msra.mxu3 %v483_v33  ;;  %v499_v63 = vld [vmem:[%s1207_s3 + $0x298] sm:$0xff]  ;;  %v448_v1 = vld [vmem:[%s1207_s3 + $0x100] sm:$0xff]  ;;  %v445_v3 = vld [vmem:[%s1207_s3 + $0xe8] sm:$0xff] }
  0xcd   : > { %532 = vmatpush.msra.mxu0 %v425_v26  ;;  %570 = vmatpush.msra.mxu2 %v432_v37  ;;  %v373_v55 = vsub.f32 %v371_v45, %v372_v50  ;;  %v496_v2 = vld [vmem:[%s1207_s3 + $0x280] sm:$0xff]  ;;  %v493_v4 = vld [vmem:[%s1207_s3 + $0x268] sm:$0xff]  ;;  %v442_v5 = vld [vmem:[%s1207_s3 + $0xd0] sm:$0xff] }
  0xce   : > { %552 = vmatpush.msra.mxu1 %v473_v27  ;;  %590 = vmatpush.msra.mxu3 %v480_v38  ;;  %v490_v6 = vld [vmem:[%s1207_s3 + $0x250] sm:$0xff]  ;;  %v439_v8 = vld [vmem:[%s1207_s3 + $0xb8] sm:$0xff]  ;;  %v436_v12 = vld [vmem:[%s1207_s3 + $0xa0] sm:$0xff] }
  0xcf   : > { %533 = vmatpush.msra.mxu0 %v422_v30  ;;  %571 = vmatpush.msra.mxu2 %v429_v46  ;;  %v374_v60 = vmax.f32 %v373_v55, 0.0  ;;  %v487_v11 = vld [vmem:[%s1207_s3 + $0x238] sm:$0xff]  ;;  %v484_v14 = vld [vmem:[%s1207_s3 + $0x220] sm:$0xff]  ;;  %v417_v15 = vld [vmem:[%s1207_s3 + $0x8] sm:$0xff] }
  0xd0   : > { %553 = vmatpush.msra.mxu1 %v470_v31  ;;  %591 = vmatpush.msra.mxu3 %v477_v47  ;;  %v468_v16 = vld [vmem:[%s1207_s3 + $0x1a0] sm:$0xff]  ;;  %v465_v18 = vld [vmem:[%s1207_s3 + $0x188] sm:$0xff]  ;;  %v430_v22 = vld [vmem:[%s1207_s3 + $0x70] sm:$0xff] }
  0xd1   : > { %534 = vmatpush.msra.mxu0 %v419_v34  ;;  %572 = vmatpush.msra.mxu2 %v426_v51  ;;  %v375_v0 = vadd.f32 1e-05, %v374_v60  ;;  %v433_v19 = vld [vmem:[%s1207_s3 + $0x88] sm:$0xff]  ;;  %v478_v23 = vld [vmem:[%s1207_s3 + $0x1f0] sm:$0xff]  ;;  %v427_v25 = vld [vmem:[%s1207_s3 + $0x58] sm:$0xff] }
  0xd2   : > { %554 = vmatpush.msra.mxu1 %v467_v35  ;;  %592 = vmatpush.msra.mxu3 %v474_v52  ;;  %v481_v20 = vld [vmem:[%s1207_s3 + $0x208] sm:$0xff]  ;;  %v475_v26 = vld [vmem:[%s1207_s3 + $0x1d8] sm:$0xff]  ;;  %v386_v28 = vld [vmem:[%s1206_s2] ss:$2 sm:$0x3] }
  0xd3   : > { %535 = vmatpush.msra.mxu0 %v416_v36  ;;  %573 = vmatpush.msra.mxu2 %v423_v56  ;;  %756 = vrsqrt.f32 %v375_v0  ;;  %vm382_vm4 = vweird.f32 %v375_v0  ;;  %v424_v29 = vld [vmem:[%s1207_s3 + $0x40] sm:$0xff]  ;;  %v421_v33 = vld [vmem:[%s1207_s3 + $0x28] sm:$0xff]  ;;  %v466_v40 = vld [vmem:[%s1207_s3 + $0x190] sm:$0xff] }
  0xd4   : > { %555 = vmatpush.msra.mxu1 %v464_v39  ;;  %593 = vmatpush.msra.mxu3 %v471_v57  ;;  %v472_v30 = vld [vmem:[%s1207_s3 + $0x1c0] sm:$0xff]  ;;  %v469_v34 = vld [vmem:[%s1207_s3 + $0x1a8] sm:$0xff]  ;;  %v418_v39 = vld [vmem:[%s1207_s3 + $0x10] sm:$0xff] }
  0xd5   : > { %600 = vmatpush.msrb.mxu0 %v463_v42  ;;  %574 = vmatpush.msra.mxu2 %v420_v61  ;;  %v723_v35 = vld [vmem:[%s1206_s2 + $0x1] ss:$2 sm:$0x3] }
  0xd6   : > { %620 = vmatpush.msrb.mxu1 %v511_v43  ;;  %594 = vmatpush.msra.mxu3 %v468_v16 }
  0xd7   : > { %601 = vmatpush.msrb.mxu0 %v460_v48  ;;  %575 = vmatpush.msra.mxu2 %v417_v15 }
  0xd8   : > { %621 = vmatpush.msrb.mxu1 %v508_v49  ;;  %595 = vmatpush.msra.mxu3 %v465_v18 }
  0xd9   : > { %602 = vmatpush.msrb.mxu0 %v457_v53  ;;  %v757_v7 = vpop.eup %756 }
  0xda   : > { %622 = vmatpush.msrb.mxu1 %v505_v54  ;;  %v377_v13 = vmul.f32 %v757_v7, %v375_v0  ;;  %vm383_vm5 = vweird.f32 %v757_v7 }
  0xdb   : > { %603 = vmatpush.msrb.mxu0 %v454_v58  ;;  %vm384_vm6 = vmor %vm382_vm4, %vm383_vm5 }
  0xdc   : > { %623 = vmatpush.msrb.mxu1 %v502_v59  ;;  %v378_v17 = vmul.f32 %v757_v7, %v377_v13 }
  0xdd   : > { %604 = vmatpush.msrb.mxu0 %v451_v62 }
  0xde   : > { %624 = vmatpush.msrb.mxu1 %v499_v63  ;;  %v379_v21 = vmul.f32 0.5, %v378_v17 }
  0xdf   : > { %605 = vmatpush.msrb.mxu0 %v448_v1 }
  0xe0   : > { %625 = vmatpush.msrb.mxu1 %v496_v2  ;;  %v380_v24 = vsub.f32 1.5, %v379_v21 }
  0xe1   : > { %606 = vmatpush.msrb.mxu0 %v445_v3 }
  0xe2   : > { %626 = vmatpush.msrb.mxu1 %v493_v4  ;;  %v381_v27 = vmul.f32 %v757_v7, %v380_v24 }
  0xe3   : > { %607 = vmatpush.msrb.mxu0 %v442_v5 }
  0xe4   : > { %627 = vmatpush.msrb.mxu1 %v490_v6  ;;  %v385_v31 = vsel %vm384_vm6, %v757_v7, %v381_v27 }
  0xe5   : > { %608 = vmatpush.msrb.mxu0 %v439_v8  ;;  %v387_v32 = vmul.f32 %v386_v28, %v385_v31 }
  0xe6   : > { %628 = vmatpush.msrb.mxu1 %v487_v11 }
  0xe7   : > { %609 = vmatpush.msrb.mxu0 %v436_v12  ;;  %v390_v36 = vmul.f32 %v387_v32, %v1049_v44  ;;  %v393_v37 = vperm.slane %v387_v32, 0  ;;  %v394_v38 = vperm.slane %v387_v32, 1 }
  0xe8   : > { %629 = vmatpush.msrb.mxu1 %v484_v14 }
  0xe9   : > { %610 = vmatpush.msrb.mxu0 %v433_v19  ;;  %v391_v41 = vsub.f32 %v723_v35, %v390_v36  ;;  %v397_v42 = vmul.f32 %v393_v37, %v867_v9  ;;  %v398_v43 = vmul.f32 %v394_v38, %v869_v10  ;;  %v512_v10 = vld [vmem:[%s1208_s4] sm:$0x7] }
  0xea   : > { %630 = vmatpush.msrb.mxu1 %v481_v20  ;;  %v514_v55 = vperm.slane %v512_v10, 0  ;;  %v515_v60 = vperm.slane %v512_v10, 1  ;;  %v516_v61 = vperm.slane %v512_v10, 2 }
  0xeb   : > { %611 = vmatpush.msrb.mxu0 %v430_v22  ;;  %v400_v44 = vperm.slane %v391_v41, 0  ;;  %v401_v45 = vperm.slane %v391_v41, 1 }
  0xec   : > { %631 = vmatpush.msrb.mxu1 %v478_v23 }
  0xed   : > { %612 = vmatpush.msrb.mxu0 %v427_v25  ;;  %v404_v46 = vadd.f32 %v400_v44, %v397_v42  ;;  %v405_v47 = vadd.f32 %v401_v45, %v398_v43 }
  0xee   : > { %632 = vmatpush.msrb.mxu1 %v475_v26 }
  0xef   : > { %613 = vmatpush.msrb.mxu0 %v424_v29  ;;  %v408_v48 = vmul.f32 1.442695, %v404_v46  ;;  %v410_v49 = vmul.f32 1.442695, %v405_v47  ;;  %vm406_vm7 = vcmp.gt.f32.partialorder %v404_v46, 0.0  ;;  %vm407_vm8 = vcmp.gt.f32.partialorder %v405_v47, 0.0 }
  0xf0   : > { %633 = vmatpush.msrb.mxu1 %v472_v30 }
  0xf1   : > { %614 = vmatpush.msrb.mxu0 %v421_v33  ;;  %758 = vpow2.f32 %v408_v48 }
  0xf2   : > { %634 = vmatpush.msrb.mxu1 %v469_v34  ;;  %760 = vpow2.f32 %v410_v49 }
  0xf3   : > { %615 = vmatpush.msrb.mxu0 %v418_v39 }
  0xf4   : > { %635 = vmatpush.msrb.mxu1 %v466_v40 }
  0xf7   : > { %v759_v50 = vpop.eup %758 }
  0xf8   : > { %v761_v51 = vpop.eup %760  ;;  %v724_v52 = vadd.f32 -1.0, %v759_v50 }
  0xf9   : > { %v725_v53 = vadd.f32 -1.0, %v761_v51 }
  0xfa   : > { %v414_v54 = vsel %vm406_vm7, %v404_v46, %v724_v52 }
  0xfb   : > { %536 = vmatmul.f32.vlgmr.msra.gmra.mxu0 %v414_v54  ;;  %v415_v9 = vsel %vm407_vm8, %v405_v47, %v725_v53  ;;  %576 = vmatmul.f32.vlgmr.msra.gmra.mxu2 %v414_v54 }
  0xfc   : > { %556 = vmatmul.f32.vlgmr.msra.gmra.mxu1 %v415_v9  ;;  %596 = vmatmul.f32.vlgmr.msra.gmra.mxu3 %v415_v9 }
 0x103   : > { %616 = vmatmul.f32.vlgmr.msrb.gmra.mxu0 %v414_v54 }
 0x104   : > { %636 = vmatmul.f32.vlgmr.msrb.gmra.mxu1 %v415_v9 }
 0x178   : > { %v537_v56 = vpop.f32.mrf.mxu0 }
 0x179   : > { %v538_v57 = vadd.f32 %v537_v56, %v514_v55  ;;  %v557_v58 = vpop.f32.mrf.mxu1 }
 0x17b   : > { %v558_v59 = vadd.f32 %v557_v58, %v538_v57 }
 0x17d   : > { %640 = vst [vmem:[%s1209_s5] sm:$0xff] %v558_v59 }
 0x17e   : > { %v577_v62 = vpop.f32.mrf.mxu2 }
 0x17f   : > { %v578_v63 = vadd.f32 %v577_v62, %v515_v60  ;;  %v597_v0 = vpop.f32.mrf.mxu3 }
 0x180   : > { %v617_v1 = vpop.f32.mrf.mxu0 }
 0x181   : > { %v618_v2 = vadd.f32 %v617_v1, %v516_v61  ;;  %v598_v3 = vadd.f32 %v597_v0, %v578_v63  ;;  %v637_v4 = vpop.f32.mrf.mxu1 }
 0x183   : > { %641 = vst [vmem:[%s1209_s5 + $0x8] sm:$0xff] %v598_v3  ;;  %v638_v5 = vadd.f32 %v637_v4, %v618_v2 }
 0x185   : > { %642 = vst.msk [vmem:[%s1209_s5 + $0x10] sm:$0xff] %vm248_vm0, %v638_v5 }
 0x186 PF: > { %s15_s20 = sadd.s32 1, %s784_s20   ;;  %s1210_s18 = smov %s780_s19 }
 0x187   : > { %p12_p7 = scmp.ge.s32.totalorder %s15_s20, 4   ;;  %s1211_s19 = smov %s1213_s21 }
 0x189   :  { %14 = sbr.rel (!%p12_p7) target bundleno = 2 (0x2), region = 83 }

</bundles_post_ra>
